<compile_context>
chip_gen: v7x
topology: tpu7x:2x2x1
jax: 0.10.0
libtpu: 0.0.40
codegen_flags: <defaults>
</compile_context>

<pallas_src>
import jax
import jax.numpy as jnp
from jax import lax
from jax.experimental import pallas as pl
from jax.experimental.pallas import tpu as pltpu

LANE = 128     # TPU lane tile (last dim)
SUBLANE = 8    # f32 sublane tile (second-to-last dim)


def _round_up(x, m):
    return (x + m - 1) // m * m


def make_lstm_kernel(T, Bp, H):
    """Fused embedding-gather + LSTM recurrence + final linear kernel."""

    def kernel(ids_ref, emb_ref, wih_ref, whh_ref, b_ref, wlin_ref, blin_ref,
               out_ref):
        # ids_ref:  (T*Bp, 1) int32   time-major, batch-padded token ids
        # emb_ref:  (V, E)            embedding table (VMEM resident)
        # wih_ref:  (E, 4H)           W_ih^T, gate columns ordered [i, f, o, g]
        # whh_ref:  (H, 4H)           W_hh^T, same column order
        # b_ref:    (1, 4H)           b_ih + b_hh, same column order
        # wlin_ref: (H, Op)           W_lin^T zero-padded to Op lanes
        # blin_ref: (1, Op)           b_lin zero-padded
        # out_ref:  (Bp, Op)
        V, _ = emb_ref.shape
        rows = T * Bp

        # ---- fused embedding gather: one-hot @ table (MXU-friendly) --------
        ids = ids_ref[...]                                        # (rows, 1)
        vocab_iota = lax.broadcasted_iota(jnp.int32, (rows, V), 1)
        onehot = (vocab_iota == ids).astype(jnp.float32)          # (rows, V)
        x = jnp.dot(onehot, emb_ref[...],
                    preferred_element_type=jnp.float32)           # (rows, E)

        # ---- input projection hoisted off the recurrent critical path ------
        xp = (jnp.dot(x, wih_ref[...], preferred_element_type=jnp.float32)
              + b_ref[...])                                       # (rows, 4H)

        # ---- fully unrolled recurrence (T is static) ------------------------
        whh = whh_ref[...]                                        # (H, 4H)
        h = jnp.zeros((Bp, H), jnp.float32)
        c = jnp.zeros((Bp, H), jnp.float32)
        for t in range(T):
            gates = xp[t * Bp:(t + 1) * Bp, :] + jnp.dot(
                h, whh, preferred_element_type=jnp.float32)       # (Bp, 4H)
            sio = jax.nn.sigmoid(gates[:, :3 * H])                # [i, f, o]
            g = jnp.tanh(gates[:, 3 * H:])
            i = sio[:, 0:H]
            f = sio[:, H:2 * H]
            o = sio[:, 2 * H:3 * H]
            c = f * c + i * g
            h = o * jnp.tanh(c)

        # ---- last-step linear, lane-dense (padded) store --------------------
        out_ref[...] = (jnp.dot(h, wlin_ref[...],
                                preferred_element_type=jnp.float32)
                        + blin_ref[...])

    return kernel


def init_torch_params(key, num_embeddings, embedding_dim, hidden_size,
                      output_size):
    """PyTorch-layout parameters (gate order [i, f, g, o])."""
    ks = jax.random.split(key, 7)
    s = 0.1
    return dict(
        embedding=jax.random.normal(ks[0], (num_embeddings, embedding_dim),
                                    jnp.float32),
        w_ih=jax.random.normal(ks[1], (4 * hidden_size, embedding_dim),
                               jnp.float32) * s,
        w_hh=jax.random.normal(ks[2], (4 * hidden_size, hidden_size),
                               jnp.float32) * s,
        b_ih=jax.random.normal(ks[3], (4 * hidden_size,), jnp.float32) * s,
        b_hh=jax.random.normal(ks[4], (4 * hidden_size,), jnp.float32) * s,
        w_lin=jax.random.normal(ks[5], (output_size, hidden_size),
                                jnp.float32) * s,
        b_lin=jax.random.normal(ks[6], (output_size,), jnp.float32) * s,
    )


def pack_params(p):
    """One-time offline repack of PyTorch-layout weights into kernel layout."""
    H = p["w_hh"].shape[1]
    O = p["w_lin"].shape[0]
    Op = _round_up(O, LANE)
    # Gate order [i, f, g, o] -> [i, f, o, g] so one sigmoid covers [:, :3H].
    perm = jnp.concatenate([
        jnp.arange(0, H), jnp.arange(H, 2 * H),
        jnp.arange(3 * H, 4 * H), jnp.arange(2 * H, 3 * H)])
    w_lin_t = jnp.zeros((H, Op), jnp.float32).at[:, :O].set(p["w_lin"].T)
    b_lin = jnp.zeros((1, Op), jnp.float32).at[:, :O].set(p["b_lin"][None, :])
    return dict(
        embedding=p["embedding"].astype(jnp.float32),                # (V, E)
        w_ih_t=jnp.transpose(p["w_ih"][perm]),                       # (E, 4H)
        w_hh_t=jnp.transpose(p["w_hh"][perm]),                       # (H, 4H)
        bias=(p["b_ih"] + p["b_hh"])[perm].reshape(1, 4 * H),        # (1, 4H)
        w_lin_t=w_lin_t,                                             # (H, Op)
        b_lin=b_lin,                                                 # (1, Op)
        hidden_size=H,
        output_size=O,
    )


def simple_lstm_forward(token_ids, packed):
    B, T = token_ids.shape
    H = packed["hidden_size"]
    O = packed["output_size"]
    Op = packed["w_lin_t"].shape[1]
    Bp = _round_up(max(B, 1), SUBLANE)

    # Time-major, batch-padded ids flattened to (T*Bp, 1) so the kernel builds
    # the one-hot gather with a cheap lane-broadcast compare.
    ids = jnp.transpose(token_ids).astype(jnp.int32)           # (T, B)
    if Bp != B:
        ids = jnp.pad(ids, ((0, 0), (0, Bp - B)))              # pad rows w/ token 0
    ids = ids.reshape(T * Bp, 1)

    kernel = make_lstm_kernel(T, Bp, H)
    vmem = pl.BlockSpec(memory_space=pltpu.MemorySpace.VMEM)
    args = (ids, packed["embedding"], packed["w_ih_t"], packed["w_hh_t"],
            packed["bias"], packed["w_lin_t"], packed["b_lin"])

    V, E = packed["embedding"].shape
    flops = (2 * T * Bp * V * E            # one-hot gather
             + 2 * T * Bp * E * 4 * H      # input projection (batched)
             + 2 * T * Bp * H * 4 * H      # recurrent matmuls
             + 2 * Bp * H * Op)            # final linear
    transcendentals = 5 * T * Bp * H
    bytes_accessed = sum(int(a.size) * a.dtype.itemsize for a in args) \
        + Bp * Op * 4

    out = pl.pallas_call(
        kernel,
        out_shape=jax.ShapeDtypeStruct((Bp, Op), jnp.float32),
        in_specs=[vmem] * len(args),
        out_specs=vmem,
        compiler_params=pltpu.CompilerParams(
            vmem_limit_bytes=16 * 1024 * 1024),
        cost_estimate=pl.CostEstimate(
            flops=flops, transcendentals=transcendentals,
            bytes_accessed=bytes_accessed),
    )(*args)

    # Drop batch / lane padding; matches torch's output.squeeze().
    return jnp.squeeze(out[:B, :O])


def reference_forward(token_ids, p):
    """Pure-JAX reference with PyTorch layout (gate order [i, f, g, o])."""
    emb = p["embedding"][token_ids].astype(jnp.float32)        # (B, T, E)
    B, T, _ = emb.shape
    H = p["w_hh"].shape[1]
    w_ih_t = p["w_ih"].T
    w_hh_t = p["w_hh"].T
    bias = p["b_ih"] + p["b_hh"]
    h = jnp.zeros((B, H), jnp.float32)
    c = jnp.zeros((B, H), jnp.float32)
    for t in range(T):
        gates = emb[:, t, :] @ w_ih_t + h @ w_hh_t + bias
        i, f, g, o = jnp.split(gates, 4, axis=1)
        c = jax.nn.sigmoid(f) * c + jax.nn.sigmoid(i) * jnp.tanh(g)
        h = jax.nn.sigmoid(o) * jnp.tanh(c)
    return jnp.squeeze(h @ p["w_lin"].T + p["b_lin"])


if __name__ == "__main__":
    # Small shapes consistent with the module's forward:
    # batch=2, seq=8, vocab=32, embedding_dim=16, hidden=32, output=8.
    NUM_EMB, E, H, O = 32, 16, 32, 8
    B, T = 2, 8

    key = jax.random.PRNGKey(0)
    k_ids, k_params = jax.random.split(key)
    token_ids = jax.random.randint(k_ids, (B, T), 0, NUM_EMB, dtype=jnp.int32)

    torch_params = init_torch_params(k_params, NUM_EMB, E, H, O)
    packed = pack_params(torch_params)

    out = simple_lstm_forward(token_ids, packed)
    out = jax.block_until_ready(out)

    ref = reference_forward(token_ids, torch_params)
    assert out.shape == ref.shape, (out.shape, ref.shape)
    assert jnp.allclose(out, ref, rtol=1e-4, atol=1e-4), "mismatch vs reference"

    print("KERNEL_OK")
</pallas_src>

<mosaic_0001>
module attributes {stable_mosaic.version = 11 : i64} {
  func.func @kernel(%arg0: memref<64x1xi32, #tpu.memory_space<vmem>>, %arg1: memref<32x16xf32, #tpu.memory_space<vmem>>, %arg2: memref<16x128xf32, #tpu.memory_space<vmem>>, %arg3: memref<32x128xf32, #tpu.memory_space<vmem>>, %arg4: memref<1x128xf32, #tpu.memory_space<vmem>>, %arg5: memref<32x128xf32, #tpu.memory_space<vmem>>, %arg6: memref<1x128xf32, #tpu.memory_space<vmem>>, %arg7: memref<8x128xf32, #tpu.memory_space<vmem>>) attributes {dimension_semantics = [], scalar_prefetch = 0 : i64, scratch_operands = 0 : i64, tpu.core_type = #tpu.core_type<tc>} {
    %c0 = arith.constant 0 : index
    %c0_0 = arith.constant 0 : index
    %0 = vector.load %arg0[%c0, %c0_0] : memref<64x1xi32, #tpu.memory_space<vmem>>, vector<64x1xi32>
    %1 = tpu.iota {dimensions = array<i32: 1>} : vector<64x32xi32>
    %2 = vector.broadcast %0 : vector<64x1xi32> to vector<64x32xi32>
    %3 = arith.cmpi eq, %1, %2 : vector<64x32xi32>
    %4 = arith.extui %3 : vector<64x32xi1> to vector<64x32xi32>
    %5 = arith.sitofp %4 : vector<64x32xi32> to vector<64x32xf32>
    %c0_1 = arith.constant 0 : index
    %c0_2 = arith.constant 0 : index
    %6 = vector.load %arg1[%c0_1, %c0_2] : memref<32x16xf32, #tpu.memory_space<vmem>>, vector<32x16xf32>
    %cst = arith.constant dense<0.000000e+00> : vector<64x16xf32>
    %7 = tpu.matmul %5, %6, %cst {dimension_numbers = #tpu.dot_dimension_numbers<[1], [0], [0], [1], [0, 0, 1, 1], [], []>} : vector<64x32xf32>, vector<32x16xf32>, vector<64x16xf32> -> vector<64x16xf32>
    %c0_3 = arith.constant 0 : index
    %c0_4 = arith.constant 0 : index
    %8 = vector.load %arg2[%c0_3, %c0_4] : memref<16x128xf32, #tpu.memory_space<vmem>>, vector<16x128xf32>
    %cst_5 = arith.constant dense<0.000000e+00> : vector<64x128xf32>
    %9 = tpu.matmul %7, %8, %cst_5 {dimension_numbers = #tpu.dot_dimension_numbers<[1], [0], [0], [1], [0, 0, 1, 1], [], []>} : vector<64x16xf32>, vector<16x128xf32>, vector<64x128xf32> -> vector<64x128xf32>
    %c0_6 = arith.constant 0 : index
    %c0_7 = arith.constant 0 : index
    %10 = vector.load %arg4[%c0_6, %c0_7] : memref<1x128xf32, #tpu.memory_space<vmem>>, vector<1x128xf32>
    %11 = vector.broadcast %10 : vector<1x128xf32> to vector<64x128xf32>
    %12 = arith.addf %9, %11 : vector<64x128xf32>
    %c0_8 = arith.constant 0 : index
    %c0_9 = arith.constant 0 : index
    %13 = vector.load %arg3[%c0_8, %c0_9] : memref<32x128xf32, #tpu.memory_space<vmem>>, vector<32x128xf32>
    %cst_10 = arith.constant 0.000000e+00 : f32
    %14 = vector.broadcast %cst_10 : f32 to vector<8x32xf32>
    %cst_11 = arith.constant 0.000000e+00 : f32
    %15 = vector.broadcast %cst_11 : f32 to vector<8x32xf32>
    %16 = vector.extract_strided_slice %12 {offsets = [0, 0], sizes = [8, 128], strides = [1, 1]} : vector<64x128xf32> to vector<8x128xf32>
    %cst_12 = arith.constant dense<0.000000e+00> : vector<8x128xf32>
    %17 = tpu.matmul %14, %13, %cst_12 {dimension_numbers = #tpu.dot_dimension_numbers<[1], [0], [0], [1], [0, 0, 1, 1], [], []>} : vector<8x32xf32>, vector<32x128xf32>, vector<8x128xf32> -> vector<8x128xf32>
    %18 = arith.addf %16, %17 : vector<8x128xf32>
    %19 = vector.extract_strided_slice %18 {offsets = [0, 0], sizes = [8, 96], strides = [1, 1]} : vector<8x128xf32> to vector<8x96xf32>
    %20 = arith.negf %19 : vector<8x96xf32>
    %21 = math.exp %20 : vector<8x96xf32>
    %cst_13 = arith.constant 1.000000e+00 : f32
    %22 = vector.broadcast %cst_13 : f32 to vector<8x96xf32>
    %23 = arith.addf %22, %21 : vector<8x96xf32>
    %24 = arith.divf %22, %23 : vector<8x96xf32>
    %25 = vector.extract_strided_slice %18 {offsets = [0, 96], sizes = [8, 32], strides = [1, 1]} : vector<8x128xf32> to vector<8x32xf32>
    %26 = math.tanh %25 : vector<8x32xf32>
    %27 = vector.extract_strided_slice %24 {offsets = [0, 0], sizes = [8, 32], strides = [1, 1]} : vector<8x96xf32> to vector<8x32xf32>
    %28 = vector.extract_strided_slice %24 {offsets = [0, 32], sizes = [8, 32], strides = [1, 1]} : vector<8x96xf32> to vector<8x32xf32>
    %29 = vector.extract_strided_slice %24 {offsets = [0, 64], sizes = [8, 32], strides = [1, 1]} : vector<8x96xf32> to vector<8x32xf32>
    %30 = arith.mulf %28, %15 : vector<8x32xf32>
    %31 = arith.mulf %27, %26 : vector<8x32xf32>
    %32 = arith.addf %30, %31 : vector<8x32xf32>
    %33 = math.tanh %32 : vector<8x32xf32>
    %34 = arith.mulf %29, %33 : vector<8x32xf32>
    %35 = vector.extract_strided_slice %12 {offsets = [8, 0], sizes = [8, 128], strides = [1, 1]} : vector<64x128xf32> to vector<8x128xf32>
    %cst_14 = arith.constant dense<0.000000e+00> : vector<8x128xf32>
    %36 = tpu.matmul %34, %13, %cst_14 {dimension_numbers = #tpu.dot_dimension_numbers<[1], [0], [0], [1], [0, 0, 1, 1], [], []>} : vector<8x32xf32>, vector<32x128xf32>, vector<8x128xf32> -> vector<8x128xf32>
    %37 = arith.addf %35, %36 : vector<8x128xf32>
    %38 = vector.extract_strided_slice %37 {offsets = [0, 0], sizes = [8, 96], strides = [1, 1]} : vector<8x128xf32> to vector<8x96xf32>
    %39 = arith.negf %38 : vector<8x96xf32>
    %40 = math.exp %39 : vector<8x96xf32>
    %cst_15 = arith.constant 1.000000e+00 : f32
    %41 = vector.broadcast %cst_15 : f32 to vector<8x96xf32>
    %42 = arith.addf %41, %40 : vector<8x96xf32>
    %43 = arith.divf %41, %42 : vector<8x96xf32>
    %44 = vector.extract_strided_slice %37 {offsets = [0, 96], sizes = [8, 32], strides = [1, 1]} : vector<8x128xf32> to vector<8x32xf32>
    %45 = math.tanh %44 : vector<8x32xf32>
    %46 = vector.extract_strided_slice %43 {offsets = [0, 0], sizes = [8, 32], strides = [1, 1]} : vector<8x96xf32> to vector<8x32xf32>
    %47 = vector.extract_strided_slice %43 {offsets = [0, 32], sizes = [8, 32], strides = [1, 1]} : vector<8x96xf32> to vector<8x32xf32>
    %48 = vector.extract_strided_slice %43 {offsets = [0, 64], sizes = [8, 32], strides = [1, 1]} : vector<8x96xf32> to vector<8x32xf32>
    %49 = arith.mulf %47, %32 : vector<8x32xf32>
    %50 = arith.mulf %46, %45 : vector<8x32xf32>
    %51 = arith.addf %49, %50 : vector<8x32xf32>
    %52 = math.tanh %51 : vector<8x32xf32>
    %53 = arith.mulf %48, %52 : vector<8x32xf32>
    %54 = vector.extract_strided_slice %12 {offsets = [16, 0], sizes = [8, 128], strides = [1, 1]} : vector<64x128xf32> to vector<8x128xf32>
    %cst_16 = arith.constant dense<0.000000e+00> : vector<8x128xf32>
    %55 = tpu.matmul %53, %13, %cst_16 {dimension_numbers = #tpu.dot_dimension_numbers<[1], [0], [0], [1], [0, 0, 1, 1], [], []>} : vector<8x32xf32>, vector<32x128xf32>, vector<8x128xf32> -> vector<8x128xf32>
    %56 = arith.addf %54, %55 : vector<8x128xf32>
    %57 = vector.extract_strided_slice %56 {offsets = [0, 0], sizes = [8, 96], strides = [1, 1]} : vector<8x128xf32> to vector<8x96xf32>
    %58 = arith.negf %57 : vector<8x96xf32>
    %59 = math.exp %58 : vector<8x96xf32>
    %cst_17 = arith.constant 1.000000e+00 : f32
    %60 = vector.broadcast %cst_17 : f32 to vector<8x96xf32>
    %61 = arith.addf %60, %59 : vector<8x96xf32>
    %62 = arith.divf %60, %61 : vector<8x96xf32>
    %63 = vector.extract_strided_slice %56 {offsets = [0, 96], sizes = [8, 32], strides = [1, 1]} : vector<8x128xf32> to vector<8x32xf32>
    %64 = math.tanh %63 : vector<8x32xf32>
    %65 = vector.extract_strided_slice %62 {offsets = [0, 0], sizes = [8, 32], strides = [1, 1]} : vector<8x96xf32> to vector<8x32xf32>
    %66 = vector.extract_strided_slice %62 {offsets = [0, 32], sizes = [8, 32], strides = [1, 1]} : vector<8x96xf32> to vector<8x32xf32>
    %67 = vector.extract_strided_slice %62 {offsets = [0, 64], sizes = [8, 32], strides = [1, 1]} : vector<8x96xf32> to vector<8x32xf32>
    %68 = arith.mulf %66, %51 : vector<8x32xf32>
    %69 = arith.mulf %65, %64 : vector<8x32xf32>
    %70 = arith.addf %68, %69 : vector<8x32xf32>
    %71 = math.tanh %70 : vector<8x32xf32>
    %72 = arith.mulf %67, %71 : vector<8x32xf32>
    %73 = vector.extract_strided_slice %12 {offsets = [24, 0], sizes = [8, 128], strides = [1, 1]} : vector<64x128xf32> to vector<8x128xf32>
    %cst_18 = arith.constant dense<0.000000e+00> : vector<8x128xf32>
    %74 = tpu.matmul %72, %13, %cst_18 {dimension_numbers = #tpu.dot_dimension_numbers<[1], [0], [0], [1], [0, 0, 1, 1], [], []>} : vector<8x32xf32>, vector<32x128xf32>, vector<8x128xf32> -> vector<8x128xf32>
    %75 = arith.addf %73, %74 : vector<8x128xf32>
    %76 = vector.extract_strided_slice %75 {offsets = [0, 0], sizes = [8, 96], strides = [1, 1]} : vector<8x128xf32> to vector<8x96xf32>
    %77 = arith.negf %76 : vector<8x96xf32>
    %78 = math.exp %77 : vector<8x96xf32>
    %cst_19 = arith.constant 1.000000e+00 : f32
    %79 = vector.broadcast %cst_19 : f32 to vector<8x96xf32>
    %80 = arith.addf %79, %78 : vector<8x96xf32>
    %81 = arith.divf %79, %80 : vector<8x96xf32>
    %82 = vector.extract_strided_slice %75 {offsets = [0, 96], sizes = [8, 32], strides = [1, 1]} : vector<8x128xf32> to vector<8x32xf32>
    %83 = math.tanh %82 : vector<8x32xf32>
    %84 = vector.extract_strided_slice %81 {offsets = [0, 0], sizes = [8, 32], strides = [1, 1]} : vector<8x96xf32> to vector<8x32xf32>
    %85 = vector.extract_strided_slice %81 {offsets = [0, 32], sizes = [8, 32], strides = [1, 1]} : vector<8x96xf32> to vector<8x32xf32>
    %86 = vector.extract_strided_slice %81 {offsets = [0, 64], sizes = [8, 32], strides = [1, 1]} : vector<8x96xf32> to vector<8x32xf32>
    %87 = arith.mulf %85, %70 : vector<8x32xf32>
    %88 = arith.mulf %84, %83 : vector<8x32xf32>
    %89 = arith.addf %87, %88 : vector<8x32xf32>
    %90 = math.tanh %89 : vector<8x32xf32>
    %91 = arith.mulf %86, %90 : vector<8x32xf32>
    %92 = vector.extract_strided_slice %12 {offsets = [32, 0], sizes = [8, 128], strides = [1, 1]} : vector<64x128xf32> to vector<8x128xf32>
    %cst_20 = arith.constant dense<0.000000e+00> : vector<8x128xf32>
    %93 = tpu.matmul %91, %13, %cst_20 {dimension_numbers = #tpu.dot_dimension_numbers<[1], [0], [0], [1], [0, 0, 1, 1], [], []>} : vector<8x32xf32>, vector<32x128xf32>, vector<8x128xf32> -> vector<8x128xf32>
    %94 = arith.addf %92, %93 : vector<8x128xf32>
    %95 = vector.extract_strided_slice %94 {offsets = [0, 0], sizes = [8, 96], strides = [1, 1]} : vector<8x128xf32> to vector<8x96xf32>
    %96 = arith.negf %95 : vector<8x96xf32>
    %97 = math.exp %96 : vector<8x96xf32>
    %cst_21 = arith.constant 1.000000e+00 : f32
    %98 = vector.broadcast %cst_21 : f32 to vector<8x96xf32>
    %99 = arith.addf %98, %97 : vector<8x96xf32>
    %100 = arith.divf %98, %99 : vector<8x96xf32>
    %101 = vector.extract_strided_slice %94 {offsets = [0, 96], sizes = [8, 32], strides = [1, 1]} : vector<8x128xf32> to vector<8x32xf32>
    %102 = math.tanh %101 : vector<8x32xf32>
    %103 = vector.extract_strided_slice %100 {offsets = [0, 0], sizes = [8, 32], strides = [1, 1]} : vector<8x96xf32> to vector<8x32xf32>
    %104 = vector.extract_strided_slice %100 {offsets = [0, 32], sizes = [8, 32], strides = [1, 1]} : vector<8x96xf32> to vector<8x32xf32>
    %105 = vector.extract_strided_slice %100 {offsets = [0, 64], sizes = [8, 32], strides = [1, 1]} : vector<8x96xf32> to vector<8x32xf32>
    %106 = arith.mulf %104, %89 : vector<8x32xf32>
    %107 = arith.mulf %103, %102 : vector<8x32xf32>
    %108 = arith.addf %106, %107 : vector<8x32xf32>
    %109 = math.tanh %108 : vector<8x32xf32>
    %110 = arith.mulf %105, %109 : vector<8x32xf32>
    %111 = vector.extract_strided_slice %12 {offsets = [40, 0], sizes = [8, 128], strides = [1, 1]} : vector<64x128xf32> to vector<8x128xf32>
    %cst_22 = arith.constant dense<0.000000e+00> : vector<8x128xf32>
    %112 = tpu.matmul %110, %13, %cst_22 {dimension_numbers = #tpu.dot_dimension_numbers<[1], [0], [0], [1], [0, 0, 1, 1], [], []>} : vector<8x32xf32>, vector<32x128xf32>, vector<8x128xf32> -> vector<8x128xf32>
    %113 = arith.addf %111, %112 : vector<8x128xf32>
    %114 = vector.extract_strided_slice %113 {offsets = [0, 0], sizes = [8, 96], strides = [1, 1]} : vector<8x128xf32> to vector<8x96xf32>
    %115 = arith.negf %114 : vector<8x96xf32>
    %116 = math.exp %115 : vector<8x96xf32>
    %cst_23 = arith.constant 1.000000e+00 : f32
    %117 = vector.broadcast %cst_23 : f32 to vector<8x96xf32>
    %118 = arith.addf %117, %116 : vector<8x96xf32>
    %119 = arith.divf %117, %118 : vector<8x96xf32>
    %120 = vector.extract_strided_slice %113 {offsets = [0, 96], sizes = [8, 32], strides = [1, 1]} : vector<8x128xf32> to vector<8x32xf32>
    %121 = math.tanh %120 : vector<8x32xf32>
    %122 = vector.extract_strided_slice %119 {offsets = [0, 0], sizes = [8, 32], strides = [1, 1]} : vector<8x96xf32> to vector<8x32xf32>
    %123 = vector.extract_strided_slice %119 {offsets = [0, 32], sizes = [8, 32], strides = [1, 1]} : vector<8x96xf32> to vector<8x32xf32>
    %124 = vector.extract_strided_slice %119 {offsets = [0, 64], sizes = [8, 32], strides = [1, 1]} : vector<8x96xf32> to vector<8x32xf32>
    %125 = arith.mulf %123, %108 : vector<8x32xf32>
    %126 = arith.mulf %122, %121 : vector<8x32xf32>
    %127 = arith.addf %125, %126 : vector<8x32xf32>
    %128 = math.tanh %127 : vector<8x32xf32>
    %129 = arith.mulf %124, %128 : vector<8x32xf32>
    %130 = vector.extract_strided_slice %12 {offsets = [48, 0], sizes = [8, 128], strides = [1, 1]} : vector<64x128xf32> to vector<8x128xf32>
    %cst_24 = arith.constant dense<0.000000e+00> : vector<8x128xf32>
    %131 = tpu.matmul %129, %13, %cst_24 {dimension_numbers = #tpu.dot_dimension_numbers<[1], [0], [0], [1], [0, 0, 1, 1], [], []>} : vector<8x32xf32>, vector<32x128xf32>, vector<8x128xf32> -> vector<8x128xf32>
    %132 = arith.addf %130, %131 : vector<8x128xf32>
    %133 = vector.extract_strided_slice %132 {offsets = [0, 0], sizes = [8, 96], strides = [1, 1]} : vector<8x128xf32> to vector<8x96xf32>
    %134 = arith.negf %133 : vector<8x96xf32>
    %135 = math.exp %134 : vector<8x96xf32>
    %cst_25 = arith.constant 1.000000e+00 : f32
    %136 = vector.broadcast %cst_25 : f32 to vector<8x96xf32>
    %137 = arith.addf %136, %135 : vector<8x96xf32>
    %138 = arith.divf %136, %137 : vector<8x96xf32>
    %139 = vector.extract_strided_slice %132 {offsets = [0, 96], sizes = [8, 32], strides = [1, 1]} : vector<8x128xf32> to vector<8x32xf32>
    %140 = math.tanh %139 : vector<8x32xf32>
    %141 = vector.extract_strided_slice %138 {offsets = [0, 0], sizes = [8, 32], strides = [1, 1]} : vector<8x96xf32> to vector<8x32xf32>
    %142 = vector.extract_strided_slice %138 {offsets = [0, 32], sizes = [8, 32], strides = [1, 1]} : vector<8x96xf32> to vector<8x32xf32>
    %143 = vector.extract_strided_slice %138 {offsets = [0, 64], sizes = [8, 32], strides = [1, 1]} : vector<8x96xf32> to vector<8x32xf32>
    %144 = arith.mulf %142, %127 : vector<8x32xf32>
    %145 = arith.mulf %141, %140 : vector<8x32xf32>
    %146 = arith.addf %144, %145 : vector<8x32xf32>
    %147 = math.tanh %146 : vector<8x32xf32>
    %148 = arith.mulf %143, %147 : vector<8x32xf32>
    %149 = vector.extract_strided_slice %12 {offsets = [56, 0], sizes = [8, 128], strides = [1, 1]} : vector<64x128xf32> to vector<8x128xf32>
    %cst_26 = arith.constant dense<0.000000e+00> : vector<8x128xf32>
    %150 = tpu.matmul %148, %13, %cst_26 {dimension_numbers = #tpu.dot_dimension_numbers<[1], [0], [0], [1], [0, 0, 1, 1], [], []>} : vector<8x32xf32>, vector<32x128xf32>, vector<8x128xf32> -> vector<8x128xf32>
    %151 = arith.addf %149, %150 : vector<8x128xf32>
    %152 = vector.extract_strided_slice %151 {offsets = [0, 0], sizes = [8, 96], strides = [1, 1]} : vector<8x128xf32> to vector<8x96xf32>
    %153 = arith.negf %152 : vector<8x96xf32>
    %154 = math.exp %153 : vector<8x96xf32>
    %cst_27 = arith.constant 1.000000e+00 : f32
    %155 = vector.broadcast %cst_27 : f32 to vector<8x96xf32>
    %156 = arith.addf %155, %154 : vector<8x96xf32>
    %157 = arith.divf %155, %156 : vector<8x96xf32>
    %158 = vector.extract_strided_slice %151 {offsets = [0, 96], sizes = [8, 32], strides = [1, 1]} : vector<8x128xf32> to vector<8x32xf32>
    %159 = math.tanh %158 : vector<8x32xf32>
    %160 = vector.extract_strided_slice %157 {offsets = [0, 0], sizes = [8, 32], strides = [1, 1]} : vector<8x96xf32> to vector<8x32xf32>
    %161 = vector.extract_strided_slice %157 {offsets = [0, 32], sizes = [8, 32], strides = [1, 1]} : vector<8x96xf32> to vector<8x32xf32>
    %162 = vector.extract_strided_slice %157 {offsets = [0, 64], sizes = [8, 32], strides = [1, 1]} : vector<8x96xf32> to vector<8x32xf32>
    %163 = arith.mulf %161, %146 : vector<8x32xf32>
    %164 = arith.mulf %160, %159 : vector<8x32xf32>
    %165 = arith.addf %163, %164 : vector<8x32xf32>
    %166 = math.tanh %165 : vector<8x32xf32>
    %167 = arith.mulf %162, %166 : vector<8x32xf32>
    %c0_28 = arith.constant 0 : index
    %c0_29 = arith.constant 0 : index
    %168 = vector.load %arg5[%c0_28, %c0_29] : memref<32x128xf32, #tpu.memory_space<vmem>>, vector<32x128xf32>
    %cst_30 = arith.constant dense<0.000000e+00> : vector<8x128xf32>
    %169 = tpu.matmul %167, %168, %cst_30 {dimension_numbers = #tpu.dot_dimension_numbers<[1], [0], [0], [1], [0, 0, 1, 1], [], []>} : vector<8x32xf32>, vector<32x128xf32>, vector<8x128xf32> -> vector<8x128xf32>
    %c0_31 = arith.constant 0 : index
    %c0_32 = arith.constant 0 : index
    %170 = vector.load %arg6[%c0_31, %c0_32] : memref<1x128xf32, #tpu.memory_space<vmem>>, vector<1x128xf32>
    %171 = vector.broadcast %170 : vector<1x128xf32> to vector<8x128xf32>
    %172 = arith.addf %169, %171 : vector<8x128xf32>
    %c0_33 = arith.constant 0 : index
    %c0_34 = arith.constant 0 : index
    %173 = vector.load %arg7[%c0_33, %c0_34] : memref<8x128xf32, #tpu.memory_space<vmem>>, vector<8x128xf32>
    tpu.vector_store %arg7[%c0_33, %c0_34], %172 {strides = array<i32>} : memref<8x128xf32, #tpu.memory_space<vmem>>, vector<8x128xf32>,
    return
  }
}

</mosaic_0001>

<bundles_post_ra>
// kernel: tpu_custom_call.1
= control target key start
LH: loop header
LB: loop body
LE: loop exit
PB: predicated region body
PF: predicated region fallthrough
CT: control target
= control target key end

     0   :  { %v1668_v2 = vmov 0   ;;  %s1938_s0 = inlined_call_operand.vmem [shape: s32[64,1], index: 0, kind: input, shape index: {}]   ;;  %s1939_s1 = inlined_call_operand.vmem [shape: f32[32,16], index: 1, kind: input, shape index: {}]   ;;  %s1940_s2 = inlined_call_operand.vmem [shape: f32[16,128], index: 2, kind: input, shape index: {}]   ;;  %s1941_s3 = inlined_call_operand.vmem [shape: f32[32,128], index: 3, kind: input, shape index: {}]   ;;  %s1942_s4 = inlined_call_operand.vmem [shape: f32[1,128], index: 4, kind: input, shape index: {}]   ;;  %s1943_s5 = inlined_call_operand.vmem [shape: f32[32,128], index: 5, kind: input, shape index: {}]   ;;  %s1944_s6 = inlined_call_operand.vmem [shape: f32[1,128], index: 6, kind: input, shape index: {}]   ;;  %s1945_s7 = inlined_call_operand.hbm [shape: f32[8,128], index: 7, kind: output, shape index: {}]  }
   0x1   :  { %v29_v0 = vld [vmem:[%s1938_s0 + $0x10] sm:$0xff]  ;;  %v27_v1 = vld [vmem:[%s1938_s0] sm:$0xff]  ;;  %1579 = vset.pattern.permute.xlu1 %v1668_v2  ;;  %1578 = vset.pattern.permute.xlu0 %v1668_v2  ;;  %v30_v3 = vld [vmem:[%s1938_s0 + $0x18] sm:$0xff] }
   0x2   :  { %44 = vperm.xlu1 %1579, %v29_v0   ;;  %38 = vperm.xlu0 %1578, %v27_v1   ;;  %v28_v4 = vld [vmem:[%s1938_s0 + $0x8] sm:$0xff]  ;;  %v85_v5 = vld [vmem:[%s1939_s1] sm:$0xff]  ;;  %v87_v7 = vld [vmem:[%s1939_s1 + $0x10] sm:$0xff] }
   0x3   :  { %v86_v6 = vld [vmem:[%s1939_s1 + $0x8] sm:$0xff]  ;;  %v88_v8 = vld [vmem:[%s1939_s1 + $0x18] sm:$0xff] }
   0x4   :  { %v1505_v9 = vpack.c.bf16 %v86_v6, %v85_v5 }
   0x5   :  { %12 = vsyncpa [#allocation3], 0  ;;  %v1509_v10 = vpack.c.bf16 %v88_v8, %v87_v7  ;;  %v32_v11 = vld [vmem:[%s1938_s0 + $0x28] sm:$0xff]  ;;  %v31_v12 = vld [vmem:[%s1938_s0 + $0x20] sm:$0xff]  ;;  %v35_v18 = vlaneseq  ;;  %vm89_vm0 = vcmask 261120   ;;  %v1669_v22 = vmov 0.0  }
   0x6   :  { %47 = vperm.xlu1 %1579, %v30_v3   ;;  %41 = vperm.xlu0 %1578, %v28_v4   ;;  %v34_v13 = vld [vmem:[%s1938_s0 + $0x38] sm:$0xff]  ;;  %v33_v14 = vld [vmem:[%s1938_s0 + $0x30] sm:$0xff]  ;;  %v219_v15 = vld [vmem:[%s1940_s2] sm:$0xff]  ;;  %v1670_v37 = vmov 0.0|0.0   ;;  %vm1671_vm9 = vmmov 0   ;;  %vm228_vm10 = vcmask 130048  }
   0x7   :  { %1506 = vmatprep.subr.bf16.mxu0 %v1505_v9  ;;  %v220_v16 = vld [vmem:[%s1940_s2 + $0x8] sm:$0xff]  ;;  %v36_v19 = vand.u32 127, %v35_v18  ;;  %v358_v38 = vld [vmem:[%s1941_s3] sm:$0xff]  ;;  %v360_v41 = vld [vmem:[%s1941_s3 + $0x10] sm:$0xff]  ;;  %s1673_s12 = smov 64  }
   0x8   :  { %1508 = vmatpush3.bf16.msra.mxu0 %v1505_v9  ;;  %v1513_v17 = vpack.c.bf16 %v220_v16, %v219_v15  ;;  %v359_v39 = vld [vmem:[%s1941_s3 + $0x8] sm:$0xff]  ;;  %v361_v42 = vld [vmem:[%s1941_s3 + $0x18] sm:$0xff]  ;;  %v1277_v52 = vld [vmem:[%s1942_s4] ss:$0 sm:$0xff]  ;;  %s1672_s4 = smov 32  }
   0x9   :  { %1510 = vmatprep.subr.bf16.mxu0 %v1509_v10  ;;  %v1781_v40 = vpack.c.bf16 %v359_v39, %v358_v38  ;;  %v1791_v43 = vpack.c.bf16 %v361_v42, %v360_v41 }
   0xa   :  { %53 = vperm.xlu1 %1579, %v32_v11   ;;  %50 = vperm.xlu0 %1578, %v31_v12  }
   0xb   :  { %1514 = vmatprep.subr.bf16.mxu1 %v1513_v17 }
   0xc   :  { %1512 = vmatpush3.bf16.msra.mxu0 %v1509_v10  ;;  %1516 = vmatpush3.bf16.msra.mxu1 %v1513_v17 }
   0xd   :  { %1517 = vmatprep.subr.bf16.mxu1 %v1670_v37  ;;  %1523 = vmatprep.subr.bf16.mxu0 %v1670_v37 }
   0xe   :  { %59 = vperm.xlu1 %1579, %v34_v13   ;;  %56 = vperm.xlu0 %1578, %v33_v14  }
  0x81   :  { %v45_v20 = vpop.permute.xlu1 %44  ;;  %v39_v21 = vpop.permute.xlu0 %38 }
  0x82   :  { %vm61_vm1 = vcmp.eq.s32.totalorder %v36_v19, %v39_v21  ;;  %vm63_vm2 = vcmp.eq.s32.totalorder %v36_v19, %v45_v20 }
  0x83   :  { %v1261_v23 = vsel %vm61_vm1, 1.0, %v1669_v22  ;;  %v1263_v26 = vsel %vm63_vm2, 1.0, %v1669_v22 }
  0x84   :  { %1378 = vmatprep.mubr.msk.f32.mxu0 %vm89_vm0, %v1261_v23 }
  0x85   :  { %v48_v24 = vpop.permute.xlu1 %47  ;;  %v42_v25 = vpop.permute.xlu0 %41 }
  0x86   :  { %vm62_vm3 = vcmp.eq.s32.totalorder %v36_v19, %v42_v25  ;;  %vm64_vm4 = vcmp.eq.s32.totalorder %v36_v19, %v48_v24 }
  0x87   :  { %v1262_v27 = vsel %vm62_vm3, 1.0, %v1669_v22  ;;  %v1264_v30 = vsel %vm64_vm4, 1.0, %v1669_v22 }
  0x88   :  { %1379 = vmatmul.mubr.msk.f32.vlgmr.msra.gmra.mrb[0].mxu0 %vm89_vm0, %v1262_v27 }
  0x89   :  { %v54_v28 = vpop.permute.xlu1 %53  ;;  %1381 = vmatprep.mubr.msk.f32.mxu0 %vm89_vm0, %v1263_v26  ;;  %v51_v29 = vpop.permute.xlu0 %50  ;;  %1525 = vmatpush3.bf16.msra.mxu0 %v1781_v40 }
  0x8a   :  { %vm65_vm5 = vcmp.eq.s32.totalorder %v36_v19, %v51_v29  ;;  %vm66_vm6 = vcmp.eq.s32.totalorder %v36_v19, %v54_v28  ;;  %1526 = vmatprep.subr.bf16.mxu0 %v1670_v37 }
  0x8b   :  { %v1265_v31 = vsel %vm65_vm5, 1.0, %v1669_v22  ;;  %v1266_v34 = vsel %vm66_vm6, 1.0, %v1669_v22 }
  0x8c   :  { %1382 = vmatmul.mubr.msk.f32.gmra.mrb[2].mxu0 %vm89_vm0, %v1264_v30 }
  0x8d   :  { %v60_v32 = vpop.permute.xlu1 %59  ;;  %1384 = vmatprep.mubr.msk.f32.mxu0 %vm89_vm0, %v1265_v31  ;;  %v57_v33 = vpop.permute.xlu0 %56  ;;  %1528 = vmatpush3.bf16.msra.mxu0 %v1791_v43 }
  0x8e   :  { %vm67_vm7 = vcmp.eq.s32.totalorder %v36_v19, %v57_v33  ;;  %vm68_vm8 = vcmp.eq.s32.totalorder %v36_v19, %v60_v32  ;;  %1535 = vmatprep.subr.bf16.mxu0 %v1670_v37 }
  0x8f   :  { %v1267_v35 = vsel %vm67_vm7, 1.0, %v1669_v22  ;;  %v1268_v36 = vsel %vm68_vm8, 1.0, %v1669_v22 }
  0x90   :  { %1385 = vmatmul.mubr.msk.f32.gmra.mrb[4].mxu0 %vm89_vm0, %v1266_v34 }
  0x91   :  { %1387 = vmatprep.mubr.msk.f32.mxu0 %vm89_vm0, %v1267_v35 }
  0x94   :  { %1388 = vmatmul.mubr.msk.f32.gmra.mrb[6].mxu0 %vm89_vm0, %v1268_v36 }
  0x95   :  { %1425 = vmatprep.mubr.msk.f32.mxu0 %vm1671_vm9, %v1669_v22 }
 0x15b   :  { %v1380_v44 = vpop.f32.mrb[0].mxu0 }
 0x15c   :  { %v180_v45 = vpop.f32.mrb[1].mxu0 }
 0x15d   :  { %1394 = vmatprep.mubr.msk.f32.mxu1 %vm228_vm10, %v180_v45 }
 0x15e   :  { %1395 = vmatmul.mubr.msk.f32.vlgmr.msra.gmra.mrb[0].mxu1 %vm228_vm10, %v1380_v44 }
 0x15f   :  { %1519 = vmatpush3.bf16.msra.mxu1 %v1781_v40  ;;  %v1383_v46 = vpop.f32.mrb[2].mxu0 }
 0x160   :  { %v190_v47 = vpop.f32.mrb[3].mxu0  ;;  %1520 = vmatprep.subr.bf16.mxu1 %v1670_v37 }
 0x161   :  { %1397 = vmatprep.mubr.msk.f32.mxu1 %vm228_vm10, %v190_v47 }
 0x162   :  { %1398 = vmatmul.mubr.msk.f32.gmra.mrb[2].mxu1 %vm228_vm10, %v1383_v46 }
 0x163   :  { %v1386_v48 = vpop.f32.mrb[4].mxu0  ;;  %1522 = vmatpush3.bf16.msra.mxu1 %v1791_v43 }
 0x164   :  { %v200_v49 = vpop.f32.mrb[5].mxu0  ;;  %1529 = vmatprep.subr.bf16.mxu1 %v1670_v37 }
 0x165   :  { %1400 = vmatprep.mubr.msk.f32.mxu1 %vm228_vm10, %v200_v49 }
 0x166   :  { %1401 = vmatmul.mubr.msk.f32.gmra.mrb[4].mxu1 %vm228_vm10, %v1386_v48 }
 0x167   :  { %v1389_v50 = vpop.f32.mrb[6].mxu0 }
 0x168   :  { %v210_v51 = vpop.f32.mrb[7].mxu0 }
 0x169   :  { %1403 = vmatprep.mubr.msk.f32.mxu1 %vm228_vm10, %v210_v51 }
 0x16a   :  { %1404 = vmatmul.mubr.msk.f32.gmra.mrb[6].mxu1 %vm228_vm10, %v1389_v50 }
 0x16b   :  { %1414 = vmatprep.mubr.msk.f32.mxu1 %vm1671_vm9, %v1669_v22 }
 0x16e   :  { %1415 = vmatmul.mubr.f32.vlgmr.msra.gmra.mrb[8].mxu1 %v1669_v22 }
 0x16f   :  { %1531 = vmatpush3.bf16.msra.mxu1 %v1781_v40  ;;  %1436 = vmatprep.mubr.msk.f32.mxu1 %vm1671_vm9, %v1669_v22 }
 0x170   :  { %1532 = vmatprep.subr.bf16.mxu1 %v1670_v37 }
 0x173   :  { %1534 = vmatpush3.bf16.msra.mxu1 %v1791_v43 }
 0x174   :  { %1541 = vmatprep.subr.bf16.mxu1 %v1670_v37 }
 0x231   :  { %v1396_v53 = vpop.f32.mrb[0].mxu1 }
 0x232   :  { %v325_v54 = vadd.f32 %v1396_v53, %v1277_v52  ;;  %v319_v55 = vpop.f32.mrb[1].mxu1 }
 0x233   :  { %v320_v4 = vadd.f32 %v1277_v52, %v319_v55 }
 0x235   :  { %v1399_v56 = vpop.f32.mrb[2].mxu1 }
 0x236   :  { %v1821_v57 = vadd.f32 %v1399_v56, %v1277_v52  ;;  %v329_v58 = vpop.f32.mrb[3].mxu1 }
 0x237   :  { %v1823_v59 = vadd.f32 %v1277_v52, %v329_v58 }
 0x239   :  { %v1402_v60 = vpop.f32.mrb[4].mxu1 }
 0x23a   :  { %v1825_v61 = vadd.f32 %v1402_v60, %v1277_v52  ;;  %v339_v62 = vpop.f32.mrb[5].mxu1 }
 0x23b   :  { %v1827_v63 = vadd.f32 %v1277_v52, %v339_v62 }
 0x23d   :  { %v1405_v0 = vpop.f32.mrb[6].mxu1 }
 0x23e   :  { %v1829_v1 = vadd.f32 %v1405_v0, %v1277_v52  ;;  %v349_v2 = vpop.f32.mrb[7].mxu1 }
 0x23f   :  { %v1831_v3 = vadd.f32 %v1277_v52, %v349_v2 }
 0x241   :  { %v431_v5 = vpop.f32.mrb[8].mxu1 }
 0x242   :  { %v435_v6 = vadd.f32 %v431_v5, %v320_v4  ;;  %v1416_v7 = vpop.f32.mrb[9].mxu1 }
 0x244   :  { %1580 = vtanh.f32 %v435_v6  ;;  %v1286_v9 = vmul.f32 -1.442695, %v435_v6 }
 0x246   :  { %1582 = vpow2.f32 %v1286_v9 }
 0x24e   :  { %v1581_v8 = vpop.eup %1580 }
 0x24f   :  { %445 = vrot.lane.b32.xlu0 %v1581_v8, %s1672_s4 }
 0x250   :  { %v1583_v10 = vpop.eup %1582 }
 0x251   :  { %v439_v11 = vadd.f32 1.0, %v1583_v10 }
 0x253   :  { %1584 = vrcp.f32 %v439_v11 }
 0x25d   :  { %v1585_v12 = vpop.eup %1584 }
 0x25e   :  { %v443_v15 = vmul.f32 0.0, %v1585_v12 }
 0x2c1   :  { %v446_v13 = vpop.permute.xlu0 %445 }
 0x2c2   :  { %v448_v14 = vmul.f32 %v1585_v12, %v446_v13 }
 0x2c4   :  { %450 = vrot.lane.b32.xlu1 %v448_v14, %s1672_s4 }
 0x336   :  { %v451_v16 = vpop.permute.xlu1 %450 }
 0x337   :  { %v453_v17 = vadd.f32 %v451_v16, %v443_v15 }
 0x339   :  { %1586 = vtanh.f32 %v453_v17 }
 0x343   :  { %v1587_v18 = vpop.eup %1586 }
 0x344   :  { %456 = vrot.lane.b32.xlu0 %v1587_v18, %s1672_s4 }
 0x3b6   :  { %v457_v19 = vpop.permute.xlu0 %456 }
 0x3b7   :  { %v459_v20 = vmul.f32 %v1585_v12, %v457_v19 }
 0x3b9   :  { %461 = vrot.lane.b32.xlu1 %v459_v20, %s1673_s12 }
 0x42b   :  { %v462_v21 = vpop.permute.xlu1 %461 }
 0x42c   :  { %1426 = vmatmul.mubr.msk.f32.vlgmr.msra.gmra.mrb[8].mxu0 %vm89_vm0, %v462_v21 }
 0x42d   :  { %1537 = vmatpush3.bf16.msra.mxu0 %v1781_v40  ;;  %1447 = vmatprep.mubr.msk.f32.mxu0 %vm1671_vm9, %v1669_v22 }
 0x42e   :  { %1538 = vmatprep.subr.bf16.mxu0 %v1670_v37 }
 0x431   :  { %1540 = vmatpush3.bf16.msra.mxu0 %v1791_v43 }
 0x432   :  { %1547 = vmatprep.subr.bf16.mxu0 %v1670_v37 }
 0x4ff   :  { %v531_v23 = vpop.f32.mrb[8].mxu0 }
 0x500   :  { %v535_v24 = vadd.f32 %v531_v23, %v325_v54  ;;  %v1427_v25 = vpop.f32.mrb[9].mxu0 }
 0x502   :  { %1588 = vtanh.f32 %v535_v24  ;;  %v1288_v27 = vmul.f32 -1.442695, %v535_v24 }
 0x504   :  { %1590 = vpow2.f32 %v1288_v27 }
 0x50c   :  { %v1589_v26 = vpop.eup %1588 }
 0x50d   :  { %545 = vrot.lane.b32.xlu0 %v1589_v26, %s1672_s4 }
 0x50e   :  { %v1591_v28 = vpop.eup %1590 }
 0x50f   :  { %v539_v29 = vadd.f32 1.0, %v1591_v28 }
 0x511   :  { %1592 = vrcp.f32 %v539_v29 }
 0x51b   :  { %v1593_v30 = vpop.eup %1592 }
 0x51c   :  { %v543_v33 = vmul.f32 %v1593_v30, %v453_v17 }
 0x57f   :  { %v546_v31 = vpop.permute.xlu0 %545 }
 0x580   :  { %v548_v32 = vmul.f32 %v1593_v30, %v546_v31 }
 0x582   :  { %550 = vrot.lane.b32.xlu1 %v548_v32, %s1672_s4 }
 0x5f4   :  { %v551_v34 = vpop.permute.xlu1 %550 }
 0x5f5   :  { %v553_v35 = vadd.f32 %v551_v34, %v543_v33 }
 0x5f7   :  { %1594 = vtanh.f32 %v553_v35 }
 0x601   :  { %v1595_v36 = vpop.eup %1594 }
 0x602   :  { %556 = vrot.lane.b32.xlu0 %v1595_v36, %s1672_s4 }
 0x674   :  { %v557_v38 = vpop.permute.xlu0 %556 }
 0x675   :  { %v559_v39 = vmul.f32 %v1593_v30, %v557_v38 }
 0x677   :  { %561 = vrot.lane.b32.xlu1 %v559_v39, %s1673_s12 }
 0x6e9   :  { %v562_v41 = vpop.permute.xlu1 %561 }
 0x6ea   :  { %1437 = vmatmul.mubr.msk.f32.vlgmr.msra.gmra.mrb[10].mxu1 %vm89_vm0, %v562_v41 }
 0x6eb   :  { %1543 = vmatpush3.bf16.msra.mxu1 %v1781_v40  ;;  %1458 = vmatprep.mubr.msk.f32.mxu1 %vm1671_vm9, %v1669_v22 }
 0x6ec   :  { %1544 = vmatprep.subr.bf16.mxu1 %v1670_v37 }
 0x6ef   :  { %1546 = vmatpush3.bf16.msra.mxu1 %v1791_v43 }
 0x6f0   :  { %1553 = vmatprep.subr.bf16.mxu1 %v1670_v37 }
 0x7bd   :  { %v631_v42 = vpop.f32.mrb[10].mxu1 }
 0x7be   :  { %v635_v44 = vadd.f32 %v631_v42, %v1823_v59  ;;  %v1438_v45 = vpop.f32.mrb[11].mxu1 }
 0x7c0   :  { %1596 = vtanh.f32 %v635_v44  ;;  %v1290_v47 = vmul.f32 -1.442695, %v635_v44 }
 0x7c2   :  { %1598 = vpow2.f32 %v1290_v47 }
 0x7ca   :  { %v1597_v46 = vpop.eup %1596 }
 0x7cb   :  { %645 = vrot.lane.b32.xlu0 %v1597_v46, %s1672_s4 }
 0x7cc   :  { %v1599_v48 = vpop.eup %1598 }
 0x7cd   :  { %v639_v49 = vadd.f32 1.0, %v1599_v48 }
 0x7cf   :  { %1600 = vrcp.f32 %v639_v49 }
 0x7d9   :  { %v1601_v50 = vpop.eup %1600 }
 0x7da   :  { %v643_v53 = vmul.f32 %v1601_v50, %v553_v35 }
 0x83d   :  { %v646_v51 = vpop.permute.xlu0 %645 }
 0x83e   :  { %v648_v52 = vmul.f32 %v1601_v50, %v646_v51 }
 0x840   :  { %650 = vrot.lane.b32.xlu1 %v648_v52, %s1672_s4 }
 0x8b2   :  { %v651_v54 = vpop.permute.xlu1 %650 }
 0x8b3   :  { %v653_v55 = vadd.f32 %v651_v54, %v643_v53 }
 0x8b5   :  { %1602 = vtanh.f32 %v653_v55 }
 0x8bf   :  { %v1603_v56 = vpop.eup %1602 }
 0x8c0   :  { %656 = vrot.lane.b32.xlu0 %v1603_v56, %s1672_s4 }
 0x932   :  { %v657_v58 = vpop.permute.xlu0 %656 }
 0x933   :  { %v659_v59 = vmul.f32 %v1601_v50, %v657_v58 }
 0x935   :  { %661 = vrot.lane.b32.xlu1 %v659_v59, %s1673_s12 }
 0x9a7   :  { %v662_v60 = vpop.permute.xlu1 %661 }
 0x9a8   :  { %1448 = vmatmul.mubr.msk.f32.vlgmr.msra.gmra.mrb[10].mxu0 %vm89_vm0, %v662_v60 }
 0x9a9   :  { %1549 = vmatpush3.bf16.msra.mxu0 %v1781_v40  ;;  %1469 = vmatprep.mubr.msk.f32.mxu0 %vm1671_vm9, %v1669_v22 }
 0x9aa   :  { %1550 = vmatprep.subr.bf16.mxu0 %v1670_v37 }
 0x9ad   :  { %1552 = vmatpush3.bf16.msra.mxu0 %v1791_v43 }
 0x9ae   :  { %1559 = vmatprep.subr.bf16.mxu0 %v1670_v37 }
 0xa7b   :  { %v731_v62 = vpop.f32.mrb[10].mxu0 }
 0xa7c   :  { %v735_v0 = vadd.f32 %v731_v62, %v1821_v57  ;;  %v1449_v2 = vpop.f32.mrb[11].mxu0 }
 0xa7e   :  { %1604 = vtanh.f32 %v735_v0  ;;  %v1292_v5 = vmul.f32 -1.442695, %v735_v0 }
 0xa80   :  { %1606 = vpow2.f32 %v1292_v5 }
 0xa88   :  { %v1605_v4 = vpop.eup %1604 }
 0xa89   :  { %745 = vrot.lane.b32.xlu0 %v1605_v4, %s1672_s4 }
 0xa8a   :  { %v1607_v6 = vpop.eup %1606 }
 0xa8b   :  { %v739_v7 = vadd.f32 1.0, %v1607_v6 }
 0xa8d   :  { %1608 = vrcp.f32 %v739_v7 }
 0xa97   :  { %v1609_v8 = vpop.eup %1608 }
 0xa98   :  { %v743_v11 = vmul.f32 %v1609_v8, %v653_v55 }
 0xafb   :  { %v746_v9 = vpop.permute.xlu0 %745 }
 0xafc   :  { %v748_v10 = vmul.f32 %v1609_v8, %v746_v9 }
 0xafe   :  { %750 = vrot.lane.b32.xlu1 %v748_v10, %s1672_s4 }
 0xb70   :  { %v751_v12 = vpop.permute.xlu1 %750 }
 0xb71   :  { %v753_v13 = vadd.f32 %v751_v12, %v743_v11 }
 0xb73   :  { %1610 = vtanh.f32 %v753_v13 }
 0xb7d   :  { %v1611_v57 = vpop.eup %1610 }
 0xb7e   :  { %756 = vrot.lane.b32.xlu0 %v1611_v57, %s1672_s4 }
 0xbf0   :  { %v757_v14 = vpop.permute.xlu0 %756 }
 0xbf1   :  { %v759_v15 = vmul.f32 %v1609_v8, %v757_v14 }
 0xbf3   :  { %761 = vrot.lane.b32.xlu1 %v759_v15, %s1673_s12 }
 0xc65   :  { %v762_v16 = vpop.permute.xlu1 %761 }
 0xc66   :  { %1459 = vmatmul.mubr.msk.f32.vlgmr.msra.gmra.mrb[12].mxu1 %vm89_vm0, %v762_v16 }
 0xc67   :  { %1555 = vmatpush3.bf16.msra.mxu1 %v1781_v40  ;;  %1480 = vmatprep.mubr.msk.f32.mxu1 %vm1671_vm9, %v1669_v22 }
 0xc68   :  { %1556 = vmatprep.subr.bf16.mxu1 %v1670_v37 }
 0xc6b   :  { %1558 = vmatpush3.bf16.msra.mxu1 %v1791_v43 }
 0xc6c   :  { %1565 = vmatprep.subr.bf16.mxu1 %v1670_v37 }
 0xd39   :  { %v831_v17 = vpop.f32.mrb[12].mxu1 }
 0xd3a   :  { %v835_v18 = vadd.f32 %v831_v17, %v1827_v63  ;;  %v1460_v19 = vpop.f32.mrb[13].mxu1 }
 0xd3b   :  { %v1161_v19 = vld [vmem:[%s1943_s5 + $0x8] sm:$0xff] }
 0xd3c   :  { %1612 = vtanh.f32 %v835_v18  ;;  %v1294_v21 = vmul.f32 -1.442695, %v835_v18 }
 0xd3e   :  { %1614 = vpow2.f32 %v1294_v21 }
 0xd46   :  { %v1613_v20 = vpop.eup %1612 }
 0xd47   :  { %845 = vrot.lane.b32.xlu0 %v1613_v20, %s1672_s4  ;;  %v1162_v20 = vld [vmem:[%s1943_s5 + $0x10] sm:$0xff] }
 0xd48   :  { %v1615_v23 = vpop.eup %1614 }
 0xd49   :  { %v839_v24 = vadd.f32 1.0, %v1615_v23  ;;  %v1163_v23 = vld [vmem:[%s1943_s5 + $0x18] sm:$0xff] }
 0xd4b   :  { %1616 = vrcp.f32 %v839_v24  ;;  %v1569_v24 = vpack.c.bf16 %v1163_v23, %v1162_v20 }
 0xd55   :  { %v1617_v25 = vpop.eup %1616 }
 0xd56   :  { %v843_v28 = vmul.f32 %v1617_v25, %v753_v13 }
 0xdb9   :  { %v846_v26 = vpop.permute.xlu0 %845 }
 0xdba   :  { %v848_v27 = vmul.f32 %v1617_v25, %v846_v26 }
 0xdbc   :  { %850 = vrot.lane.b32.xlu1 %v848_v27, %s1672_s4 }
 0xe2e   :  { %v851_v29 = vpop.permute.xlu1 %850 }
 0xe2f   :  { %v853_v30 = vadd.f32 %v851_v29, %v843_v28  ;;  %v1301_v29 = vld [vmem:[%s1944_s6] ss:$0 sm:$0xff] }
 0xe31   :  { %1618 = vtanh.f32 %v853_v30 }
 0xe3b   :  { %v1619_v63 = vpop.eup %1618 }
 0xe3c   :  { %856 = vrot.lane.b32.xlu0 %v1619_v63, %s1672_s4 }
 0xeae   :  { %v857_v31 = vpop.permute.xlu0 %856 }
 0xeaf   :  { %v859_v32 = vmul.f32 %v1617_v25, %v857_v31 }
 0xeb1   :  { %861 = vrot.lane.b32.xlu1 %v859_v32, %s1673_s12 }
 0xf23   :  { %v862_v33 = vpop.permute.xlu1 %861 }
 0xf24   :  { %1470 = vmatmul.mubr.msk.f32.vlgmr.msra.gmra.mrb[12].mxu0 %vm89_vm0, %v862_v33 }
 0xf25   :  { %1561 = vmatpush3.bf16.msra.mxu0 %v1781_v40  ;;  %1491 = vmatprep.mubr.msk.f32.mxu0 %vm1671_vm9, %v1669_v22 }
 0xf26   :  { %1562 = vmatprep.subr.bf16.mxu0 %v1670_v37 }
 0xf29   :  { %1564 = vmatpush3.bf16.msra.mxu0 %v1791_v43 }
 0xff7   :  { %v931_v34 = vpop.f32.mrb[12].mxu0 }
 0xff8   :  { %v935_v35 = vadd.f32 %v931_v34, %v1825_v61  ;;  %v1471_v36 = vpop.f32.mrb[13].mxu0 }
 0xffa   :  { %1620 = vtanh.f32 %v935_v35  ;;  %v1296_v39 = vmul.f32 -1.442695, %v935_v35 }
 0xffc   :  { %1622 = vpow2.f32 %v1296_v39 }
0x1004   :  { %v1621_v38 = vpop.eup %1620 }
0x1005   :  { %945 = vrot.lane.b32.xlu0 %v1621_v38, %s1672_s4 }
0x1006   :  { %v1623_v41 = vpop.eup %1622 }
0x1007   :  { %v939_v42 = vadd.f32 1.0, %v1623_v41 }
0x1009   :  { %1624 = vrcp.f32 %v939_v42 }
0x1013   :  { %v1625_v40 = vpop.eup %1624 }
0x1014   :  { %v943_v46 = vmul.f32 %v1625_v40, %v853_v30 }
0x1077   :  { %v946_v44 = vpop.permute.xlu0 %945 }
0x1078   :  { %v948_v45 = vmul.f32 %v1625_v40, %v946_v44 }
0x107a   :  { %950 = vrot.lane.b32.xlu1 %v948_v45, %s1672_s4 }
0x10ec   :  { %v951_v43 = vpop.permute.xlu1 %950 }
0x10ed   :  { %v953_v47 = vadd.f32 %v951_v43, %v943_v46 }
0x10ef   :  { %1626 = vtanh.f32 %v953_v47 }
0x10f9   :  { %v1627_v61 = vpop.eup %1626 }
0x10fa   :  { %956 = vrot.lane.b32.xlu0 %v1627_v61, %s1672_s4 }
0x116c   :  { %v957_v48 = vpop.permute.xlu0 %956 }
0x116d   :  { %v959_v49 = vmul.f32 %v1625_v40, %v957_v48 }
0x116f   :  { %961 = vrot.lane.b32.xlu1 %v959_v49, %s1673_s12 }
0x11e1   :  { %v962_v50 = vpop.permute.xlu1 %961 }
0x11e2   :  { %1481 = vmatmul.mubr.msk.f32.vlgmr.msra.gmra.mrb[14].mxu1 %vm89_vm0, %v962_v50 }
0x11e3   :  { %1502 = vmatprep.mubr.msk.f32.mxu1 %vm1671_vm9, %v1669_v22 }
0x12b5   :  { %v1031_v51 = vpop.f32.mrb[14].mxu1 }
0x12b6   :  { %v1035_v52 = vadd.f32 %v1031_v51, %v1831_v3  ;;  %v1482_v53 = vpop.f32.mrb[15].mxu1 }
0x12b8   :  { %1628 = vtanh.f32 %v1035_v52  ;;  %v1298_v55 = vmul.f32 -1.442695, %v1035_v52 }
0x12ba   :  { %1630 = vpow2.f32 %v1298_v55 }
0x12c2   :  { %v1629_v54 = vpop.eup %1628 }
0x12c3   :  { %1045 = vrot.lane.b32.xlu0 %v1629_v54, %s1672_s4 }
0x12c4   :  { %v1631_v56 = vpop.eup %1630 }
0x12c5   :  { %v1039_v58 = vadd.f32 1.0, %v1631_v56 }
0x12c7   :  { %1632 = vrcp.f32 %v1039_v58 }
0x12d1   :  { %v1633_v59 = vpop.eup %1632 }
0x12d2   :  { %v1043_v0 = vmul.f32 %v1633_v59, %v953_v47 }
0x1335   :  { %v1046_v60 = vpop.permute.xlu0 %1045 }
0x1336   :  { %v1048_v62 = vmul.f32 %v1633_v59, %v1046_v60 }
0x1338   :  { %1050 = vrot.lane.b32.xlu1 %v1048_v62, %s1672_s4 }
0x13aa   :  { %v1051_v22 = vpop.permute.xlu1 %1050 }
0x13ab   :  { %v1053_v2 = vadd.f32 %v1051_v22, %v1043_v0 }
0x13ad   :  { %1634 = vtanh.f32 %v1053_v2 }
0x13b7   :  { %v1635_v3 = vpop.eup %1634 }
0x13b8   :  { %1056 = vrot.lane.b32.xlu0 %v1635_v3, %s1672_s4 }
0x142a   :  { %v1057_v4 = vpop.permute.xlu0 %1056 }
0x142b   :  { %v1059_v5 = vmul.f32 %v1633_v59, %v1057_v4 }
0x142d   :  { %1061 = vrot.lane.b32.xlu1 %v1059_v5, %s1673_s12 }
0x149f   :  { %v1062_v6 = vpop.permute.xlu1 %1061 }
0x14a0   :  { %1492 = vmatmul.mubr.msk.f32.vlgmr.msra.gmra.mrb[14].mxu0 %vm89_vm0, %v1062_v6 }
0x1573   :  { %v1131_v7 = vpop.f32.mrb[14].mxu0 }
0x1574   :  { %v1135_v8 = vadd.f32 %v1131_v7, %v1829_v1  ;;  %v1493_v9 = vpop.f32.mrb[15].mxu0  ;;  %v1160_v1 = vld [vmem:[%s1943_s5] sm:$0xff]  ;;  %s1674_s5 = smov [#allocation2]  }
0x1575   :  { %v1566_v21 = vpack.c.bf16 %v1161_v19, %v1160_v1  ;;  %s1253_s22 = sshll.u32 %s1674_s5, 4  ;;  %s1254_s22 = int_to_ptr.vmem [resolvable:$true] %s1253_s22 }
0x1576   :  { %1636 = vtanh.f32 %v1135_v8  ;;  %v1300_v11 = vmul.f32 -1.442695, %v1135_v8  ;;  %s1644_s23 = scalar_lea.vmem %s1254_s22, 128  ;;  %p1649_p1 = scmp.lt.s32.totalorder %s1254_s22, %s1254_s22 }
0x1577   :  { %1567 = vmatpush3.bf16.msra.mxu1 %v1566_v21  ;;  %p1645_p0 = scmp.ne.s32.totalorder %s1254_s22, %s1644_s23  ;;  %p1650_p2 = scmp.lt.s32.totalorder %s1644_s23, %s1644_s23 }
0x1578   :  { %1638 = vpow2.f32 %v1300_v11  ;;  %1568 = vmatprep.subr.bf16.mxu1 %v1670_v37 }
0x1579   :  { %p1651_p3 = por %p1650_p2, %p1649_p1 }
0x157b   :  { %1570 = vmatpush3.bf16.msra.mxu1 %v1569_v24  ;;  %p1652_p4 = pnand %p1651_p3, %p1645_p0 }
0x1580   :  { %v1637_v10 = vpop.eup %1636 }
0x1581   :  { %1145 = vrot.lane.b32.xlu0 %v1637_v10, %s1672_s4 }
0x1582   :  { %v1639_v12 = vpop.eup %1638 }
0x1583   :  { %v1139_v13 = vadd.f32 1.0, %v1639_v12 }
0x1585   :  { %1640 = vrcp.f32 %v1139_v13 }
0x158f   :  { %v1641_v57 = vpop.eup %1640 }
0x1590   :  { %v1143_v16 = vmul.f32 %v1641_v57, %v1053_v2 }
0x15f3   :  { %v1146_v14 = vpop.permute.xlu0 %1145 }
0x15f4   :  { %v1148_v15 = vmul.f32 %v1641_v57, %v1146_v14 }
0x15f6   :  { %1150 = vrot.lane.b32.xlu1 %v1148_v15, %s1672_s4 }
0x1668   :  { %v1151_v17 = vpop.permute.xlu1 %1150 }
0x1669   :  { %v1153_v18 = vadd.f32 %v1151_v17, %v1143_v16 }
0x166b   :  { %1642 = vtanh.f32 %v1153_v18 }
0x1675   :  { %v1643_v25 = vpop.eup %1642 }
0x1676   :  { %1156 = vrot.lane.b32.xlu0 %v1643_v25, %s1672_s4 }
0x16e8   :  { %v1157_v26 = vpop.permute.xlu0 %1156 }
0x16e9   :  { %v1159_v27 = vmul.f32 %v1641_v57, %v1157_v26 }
0x16eb   :  { %1172 = vrot.lane.b32.xlu1 %v1159_v27, %s1673_s12 }
0x175d   :  { %v1173_v28 = vpop.permute.xlu1 %1172 }
0x175e   :  { %1503 = vmatmul.mubr.msk.f32.vlgmr.msra.gmra.mrb[16].mxu1 %vm89_vm0, %v1173_v28 }
0x1831   :  { %v1242_v30 = vpop.f32.mrb[16].mxu1 }
0x1832   :  { %v1243_v63 = vadd.f32 %v1301_v29, %v1242_v30  ;;  %v1504_v37 = vpop.f32.mrb[17].mxu1 }
0x1834   :  { %1246 = vst [vmem:[#allocation2] sm:$0xff] %v1243_v63 }
0x1835   :  { %1655 = shalt.err (!%p1652_p4)
}
0x1836   :  { %s1656_s26 = scalar_lea.hbm %s1945_s7, 128 }
0x1837   :  { %p1657_p5 = scmp.ne.s32.totalorder %s1945_s7, %s1656_s26  ;;  %p1660_p6 = scmp.lt.u32.totalorder %s1656_s26, %s1945_s7 }
0x1839   :  { %p1662_p7 = pnand %p1660_p6, %p1657_p5 }
0x183b   :  { %1665 = shalt.err (!%p1662_p7)
}
0x183c   :  { %1256 = dma.vmem_to_hbm [thread:$0]  %s1254_s22, 128, %s1945_s7, [#allocation3]  }
0x183d   :  { %1666 = dma.done.wait [#allocation3], 128  }
0x183e   :  { %1667 = vsyncadd [#allocation3], 4294967168 }
0x183f   :  { %1260 = vsyncpa [#allocation3], 1 }

</bundles_post_ra>
